<compile_context>
chip_gen: v7x
topology: tpu7x:2x2x1
jax: 0.10.0
libtpu: 0.0.40
codegen_flags: <defaults>
</compile_context>

<pallas_src>
import math
from functools import partial

import jax
import jax.numpy as jnp
from jax.experimental import pallas as pl
from jax.experimental.pallas import tpu as pltpu


def _itemsize(dtype):
    return jax.dtypes.canonicalize_dtype(dtype).itemsize


# -----------------------------------------------------------------------------
# Pallas kernel: fused 3x3 "same" conv (stride 1, groups 1, no bias).
# Input is NHWC (padded); output tile is stored transposed -> NCHW order.
# -----------------------------------------------------------------------------
def _make_conv_kernel(TH, W, Cin, Cout):
    def kernel(x_ref, w_ref, o_ref):
        # x_ref: (1, H+2, W+2, Cin)  full padded image (resident across row tiles)
        # w_ref: (9, Cin, Cout)      packed taps, index t = 3*kw + kh -> w_hwio[kh, kw]
        # o_ref: (1, Cout, TH*W)     one output row-tile, transposed (lane-dense store)
        r = pl.program_id(1)
        row0 = r * TH                                   # first padded input row of this tile
        acc = jnp.zeros((TH * W, Cout), jnp.float32)
        for kw in range(3):                             # kw shift hoisted: 3 window loads, not 9
            sh = x_ref[0, pl.ds(row0, TH + 2), pl.ds(kw, W), :]   # (TH+2, W, Cin)
            sh = sh.reshape((TH + 2) * W, Cin)          # minor dim unchanged -> cheap
            for kh in range(3):                         # kh shift = leading-dim slice (free)
                piece = sh[kh * W:(kh + TH) * W]        # (TH*W, Cin)
                acc = acc + jnp.dot(piece, w_ref[3 * kw + kh],
                                    preferred_element_type=jnp.float32)
        # Transposed store: minor dim is TH*W (>=128) instead of small Cout, and
        # the result is already laid out as NCHW (no wrapper transpose needed).
        o_ref[0] = acc.T.astype(o_ref.dtype)
    return kernel


def _pick_tile_rows(H, W, Cin, Cout, compute_dtype, max_tile_bytes=2 << 20):
    """Largest row tile TH (multiple of 8, divides H, TH*W % 128 == 0) whose
    per-step working set stays under max_tile_bytes; falls back to TH = H."""
    isz = _itemsize(compute_dtype)

    def tile_bytes(th):
        return 4 * (th + 2) * (W + 2) * Cin * isz + 2 * th * W * Cout * 4

    valid = [th for th in range(8, H + 1, 8)
             if H % th == 0 and (th * W) % 128 == 0]
    if not valid:
        return H
    under = [th for th in valid if tile_bytes(th) <= max_tile_bytes]
    return max(under) if under else min(valid)


def sficonv_conv3x3(x_nchw, w_pack, *, tile_rows=None, compute_dtype=jnp.bfloat16):
    """Fused 3x3 conv, padding=1, stride=1, groups=1, no bias.

    x_nchw: (N, Cin, H, W); w_pack: (9, Cin, Cout) with tap t = 3*kw + kh.
    Returns (N, Cout, H, W) float32.
    """
    N, Cin, H, W = x_nchw.shape
    ntaps, cin_w, Cout = w_pack.shape
    assert ntaps == 9 and cin_w == Cin
    TH = tile_rows if tile_rows is not None else _pick_tile_rows(
        H, W, Cin, Cout, compute_dtype)
    assert H % TH == 0, "tile_rows must divide H"
    assert (TH * W) % 128 == 0 or TH == H, "row tile must give a 128-aligned output block"
    R = H // TH

    # Wrapper glue (fused by XLA under jit): NCHW -> NHWC, 1px zero pad, cast
    # to the MXU dtype.  The output side needs no transpose (kernel emits NCHW).
    xq = jnp.pad(jnp.transpose(x_nchw, (0, 2, 3, 1)),
                 ((0, 0), (1, 1), (1, 1), (0, 0))).astype(compute_dtype)
    wq = w_pack.astype(compute_dtype)

    # Scoped-VMEM budget derived from the actual blocks (v5e default is only
    # 16 MiB, v7x physical is 64 MiB -> keep double buffering alive).
    isz = _itemsize(compute_dtype)
    vmem_est = (2 * (H + 2) * (W + 2) * Cin * isz      # padded image (x2 buffers)
                + 2 * 9 * Cin * Cout * isz             # packed weights
                + 2 * Cout * TH * W * 4                # output tile (x2 buffers)
                + 4 * (TH + 2) * W * Cin * isz         # in-kernel slab temporaries
                + 2 * TH * W * Cout * 4)               # accumulator / transpose temp
    vmem_limit = int(min(64 * 2 ** 20, max(32 * 2 ** 20, 2 * vmem_est)))

    y = pl.pallas_call(
        _make_conv_kernel(TH, W, Cin, Cout),
        out_shape=jax.ShapeDtypeStruct((N, Cout, H * W), jnp.float32),
        grid=(N, R),
        in_specs=[
            # Full padded image; block index is constant along the row-tile axis
            # so Pallas keeps it resident in VMEM (no re-DMA per row tile).
            pl.BlockSpec((1, H + 2, W + 2, Cin), lambda n, r: (n, 0, 0, 0)),
            # Packed weights: constant index -> DMA'd once, stays resident.
            pl.BlockSpec((9, Cin, Cout), lambda n, r: (0, 0, 0)),
        ],
        out_specs=pl.BlockSpec((1, Cout, TH * W), lambda n, r: (n, 0, r)),
        compiler_params=pltpu.CompilerParams(
            dimension_semantics=("parallel", "parallel"),   # megacore on v7x
            vmem_limit_bytes=vmem_limit,
        ),
    )(xq, wq)
    return y.reshape(N, Cout, H, W)   # metadata-only reshape (already NCHW order)


# -----------------------------------------------------------------------------
# Parameters / module wrapper (mimics torch.nn.Conv2d default init bounds).
# -----------------------------------------------------------------------------
def _init_conv_weight(key, cout, cin, k=3):
    bound = 1.0 / math.sqrt(cin * k * k)
    return jax.random.uniform(key, (cout, cin, k, k), jnp.float32, -bound, bound)


def _avg_pool2x2(x_nchw):
    N, C, H, W = x_nchw.shape
    return x_nchw.reshape(N, C, H // 2, 2, W // 2, 2).mean(axis=(3, 5))


@partial(jax.jit, static_argnames=("c_s_out", "stride", "tile_rows", "compute_dtype"))
def _sficonv_forward(X_s, X_f, w_pack, *, c_s_out, stride, tile_rows, compute_dtype):
    if stride == 2:
        X_s, X_f = _avg_pool2x2(X_s), _avg_pool2x2(X_f)
    x_cat = jnp.concatenate([X_s, X_f], axis=1)          # NCHW, channels [slow, fast]
    y = sficonv_conv3x3(x_cat, w_pack, tile_rows=tile_rows,
                        compute_dtype=compute_dtype)      # (N, Cout_s + Cout_f, H, W)
    return y[:, :c_s_out], y[:, c_s_out:]


class SFIConvPallas:
    """SFIConv forward (alpha in (0,1), groups=1, bias=False, k=3, padding=1)."""

    def __init__(self, in_channels, out_channels, kernel_size=(3, 3), alpha=0.5,
                 stride=1, key=None, compute_dtype=jnp.bfloat16, tile_rows=None):
        assert kernel_size[0] == 3, "this Pallas port implements k=3, padding=1"
        assert stride in (1, 2), "Stride should be 1 or 2."
        assert 0 < alpha < 1
        if key is None:
            key = jax.random.PRNGKey(0)
        self.stride = stride
        self.compute_dtype = compute_dtype
        self.tile_rows = tile_rows

        c_f_in = int(alpha * in_channels)
        c_s_in = in_channels - c_f_in
        c_f_out = int(alpha * out_channels)
        c_s_out = out_channels - c_f_out
        self.c_s_in, self.c_f_in = c_s_in, c_f_in
        self.c_s_out, self.c_f_out = c_s_out, c_f_out

        k0, k1, k2, k3 = jax.random.split(key, 4)
        w_f2f = _init_conv_weight(k0, c_f_out, c_f_in)
        w_f2s = _init_conv_weight(k1, c_s_out, c_f_in)
        w_s2f = _init_conv_weight(k2, c_f_out, c_s_in)
        w_s2s = _init_conv_weight(k3, c_s_out, c_s_in)

        # Branch fusion:
        #   slow out = conv([X_s, X_f], [w_s2s ; w_f2s] along Cin)
        #   fast out = conv([X_s, X_f], [w_s2f ; w_f2f] along Cin)
        # and the two branches fused along Cout so the shared input is read once.
        w_slow = jnp.concatenate([w_s2s, w_f2s], axis=1)   # (c_s_out, Cin, 3, 3)
        w_fast = jnp.concatenate([w_s2f, w_f2f], axis=1)   # (c_f_out, Cin, 3, 3)
        w_all = jnp.concatenate([w_slow, w_fast], axis=0)  # OIHW (Cout, Cin, 3, 3)
        self.w_hwio = jnp.transpose(w_all, (2, 3, 1, 0))   # (3, 3, Cin, Cout)
        # Pre-packed taps for the kernel: index t = 3*kw + kh -> w_hwio[kh, kw].
        self.w_pack = jnp.stack(
            [self.w_hwio[kh, kw] for kw in range(3) for kh in range(3)], axis=0)

    def __call__(self, x):
        X_s, X_f = x   # NCHW tensors, like the PyTorch module
        return _sficonv_forward(X_s, X_f, self.w_pack,
                                c_s_out=self.c_s_out, stride=self.stride,
                                tile_rows=self.tile_rows,
                                compute_dtype=self.compute_dtype)


# -----------------------------------------------------------------------------
# Pure-XLA reference (same bf16 operand cast) to validate the Pallas kernel.
# -----------------------------------------------------------------------------
def _ref_branches(mod, X_s, X_f):
    if mod.stride == 2:
        X_s, X_f = _avg_pool2x2(X_s), _avg_pool2x2(X_f)
    x = jnp.transpose(jnp.concatenate([X_s, X_f], axis=1), (0, 2, 3, 1))
    x = x.astype(mod.compute_dtype)
    w = mod.w_hwio.astype(mod.compute_dtype)
    y = jax.lax.conv_general_dilated(
        x, w, window_strides=(1, 1), padding=((1, 1), (1, 1)),
        dimension_numbers=("NHWC", "HWIO", "NHWC"),
        preferred_element_type=jnp.float32)
    y = jnp.transpose(y, (0, 3, 1, 2))
    return y[:, :mod.c_s_out], y[:, mod.c_s_out:]


if __name__ == "__main__":
    key = jax.random.PRNGKey(0)
    k_in, k_mod1, k_mod2 = jax.random.split(key, 3)

    in_channels, out_channels, alpha = 4, 8, 0.5
    N, H, W = 2, 16, 16
    c_f_in = int(alpha * in_channels)
    c_s_in = in_channels - c_f_in
    c_f_out = int(alpha * out_channels)
    c_s_out = out_channels - c_f_out

    k_s, k_f = jax.random.split(k_in)
    X_s = jax.random.normal(k_s, (N, c_s_in, H, W), jnp.float32)
    X_f = jax.random.normal(k_f, (N, c_f_in, H, W), jnp.float32)

    # stride=1, explicit row tiling (2 row tiles per image) -------------------
    mod1 = SFIConvPallas(in_channels, out_channels, (3, 3), alpha=alpha,
                         stride=1, key=k_mod1, tile_rows=8)
    Y_s, Y_f = mod1((X_s, X_f))
    Y_s, Y_f = jax.block_until_ready(Y_s), jax.block_until_ready(Y_f)
    R_s, R_f = _ref_branches(mod1, X_s, X_f)
    assert Y_s.shape == (N, c_s_out, H, W) and Y_f.shape == (N, c_f_out, H, W)
    assert jnp.allclose(Y_s, R_s, atol=2e-3, rtol=2e-3)
    assert jnp.allclose(Y_f, R_f, atol=2e-3, rtol=2e-3)

    # stride=2 (avg-pool then conv), automatic tile selection -----------------
    mod2 = SFIConvPallas(in_channels, out_channels, (3, 3), alpha=alpha,
                         stride=2, key=k_mod2)
    Z_s, Z_f = mod2((X_s, X_f))
    Z_s, Z_f = jax.block_until_ready(Z_s), jax.block_until_ready(Z_f)
    S_s, S_f = _ref_branches(mod2, X_s, X_f)
    assert Z_s.shape == (N, c_s_out, H // 2, W // 2)
    assert Z_f.shape == (N, c_f_out, H // 2, W // 2)
    assert jnp.allclose(Z_s, S_s, atol=2e-3, rtol=2e-3)
    assert jnp.allclose(Z_f, S_f, atol=2e-3, rtol=2e-3)

    print("KERNEL_OK")
</pallas_src>

<mosaic_0001>
module attributes {stable_mosaic.version = 11 : i64} {
  func.func @kernel(%arg0: i32, %arg1: i32, %arg2: memref<1x18x18x4xbf16, #tpu.memory_space<vmem>>, %arg3: memref<9x4x8xbf16, #tpu.memory_space<vmem>>, %arg4: memref<1x8x128xf32, #tpu.memory_space<vmem>>) attributes {dimension_semantics = [#tpu.dimension_semantics<parallel>, #tpu.dimension_semantics<parallel>], iteration_bounds = array<i64: 2, 2>, scalar_prefetch = 0 : i64, scratch_operands = 0 : i64, tpu.core_type = #tpu.core_type<tc>, window_params = [{transform_indices = @transform_0, window_bounds = array<i64: 1, 18, 18, 4>}, {pipeline_mode = #tpu.pipeline_mode<synchronous>, transform_indices = @transform_1, window_bounds = array<i64: 9, 4, 8>}, {transform_indices = @transform_2, window_bounds = array<i64: 1, 8, 128>}]} {
    %c8_i32 = arith.constant 8 : i32
    %0 = arith.muli %arg1, %c8_i32 : i32
    %cst = arith.constant 0.000000e+00 : f32
    %1 = vector.broadcast %cst : f32 to vector<128x8xf32>
    %c0 = arith.constant 0 : index
    %2 = arith.index_cast %0 : i32 to index
    %c0_0 = arith.constant 0 : index
    %c0_1 = arith.constant 0 : index
    %3 = vector.load %arg2[%c0, %2, %c0_0, %c0_1] : memref<1x18x18x4xbf16, #tpu.memory_space<vmem>>, vector<1x10x16x4xbf16>
    %4 = vector.shape_cast %3 : vector<1x10x16x4xbf16> to vector<10x16x4xbf16>
    %5 = vector.shape_cast %4 : vector<10x16x4xbf16> to vector<160x4xbf16>
    %6 = vector.extract_strided_slice %5 {offsets = [0, 0], sizes = [128, 4], strides = [1, 1]} : vector<160x4xbf16> to vector<128x4xbf16>
    %c0_2 = arith.constant 0 : index
    %c0_3 = arith.constant 0 : index
    %c0_4 = arith.constant 0 : index
    %7 = vector.load %arg3[%c0_2, %c0_3, %c0_4] : memref<9x4x8xbf16, #tpu.memory_space<vmem>>, vector<1x4x8xbf16>
    %8 = vector.shape_cast %7 : vector<1x4x8xbf16> to vector<4x8xbf16>
    %cst_5 = arith.constant dense<0.000000e+00> : vector<128x8xf32>
    %9 = tpu.matmul %6, %8, %cst_5 {dimension_numbers = #tpu.dot_dimension_numbers<[1], [0], [0], [1], [0, 0, 1, 1], [], []>} : vector<128x4xbf16>, vector<4x8xbf16>, vector<128x8xf32> -> vector<128x8xf32>
    %10 = arith.addf %1, %9 : vector<128x8xf32>
    %11 = vector.extract_strided_slice %5 {offsets = [16, 0], sizes = [128, 4], strides = [1, 1]} : vector<160x4xbf16> to vector<128x4xbf16>
    %c1 = arith.constant 1 : index
    %c0_6 = arith.constant 0 : index
    %c0_7 = arith.constant 0 : index
    %12 = vector.load %arg3[%c1, %c0_6, %c0_7] : memref<9x4x8xbf16, #tpu.memory_space<vmem>>, vector<1x4x8xbf16>
    %13 = vector.shape_cast %12 : vector<1x4x8xbf16> to vector<4x8xbf16>
    %cst_8 = arith.constant dense<0.000000e+00> : vector<128x8xf32>
    %14 = tpu.matmul %11, %13, %cst_8 {dimension_numbers = #tpu.dot_dimension_numbers<[1], [0], [0], [1], [0, 0, 1, 1], [], []>} : vector<128x4xbf16>, vector<4x8xbf16>, vector<128x8xf32> -> vector<128x8xf32>
    %15 = arith.addf %10, %14 : vector<128x8xf32>
    %16 = vector.extract_strided_slice %5 {offsets = [32, 0], sizes = [128, 4], strides = [1, 1]} : vector<160x4xbf16> to vector<128x4xbf16>
    %c2 = arith.constant 2 : index
    %c0_9 = arith.constant 0 : index
    %c0_10 = arith.constant 0 : index
    %17 = vector.load %arg3[%c2, %c0_9, %c0_10] : memref<9x4x8xbf16, #tpu.memory_space<vmem>>, vector<1x4x8xbf16>
    %18 = vector.shape_cast %17 : vector<1x4x8xbf16> to vector<4x8xbf16>
    %cst_11 = arith.constant dense<0.000000e+00> : vector<128x8xf32>
    %19 = tpu.matmul %16, %18, %cst_11 {dimension_numbers = #tpu.dot_dimension_numbers<[1], [0], [0], [1], [0, 0, 1, 1], [], []>} : vector<128x4xbf16>, vector<4x8xbf16>, vector<128x8xf32> -> vector<128x8xf32>
    %20 = arith.addf %15, %19 : vector<128x8xf32>
    %c0_12 = arith.constant 0 : index
    %21 = arith.index_cast %0 : i32 to index
    %c1_13 = arith.constant 1 : index
    %c0_14 = arith.constant 0 : index
    %22 = vector.load %arg2[%c0_12, %21, %c1_13, %c0_14] : memref<1x18x18x4xbf16, #tpu.memory_space<vmem>>, vector<1x10x16x4xbf16>
    %23 = vector.shape_cast %22 : vector<1x10x16x4xbf16> to vector<10x16x4xbf16>
    %24 = vector.shape_cast %23 : vector<10x16x4xbf16> to vector<160x4xbf16>
    %25 = vector.extract_strided_slice %24 {offsets = [0, 0], sizes = [128, 4], strides = [1, 1]} : vector<160x4xbf16> to vector<128x4xbf16>
    %c3 = arith.constant 3 : index
    %c0_15 = arith.constant 0 : index
    %c0_16 = arith.constant 0 : index
    %26 = vector.load %arg3[%c3, %c0_15, %c0_16] : memref<9x4x8xbf16, #tpu.memory_space<vmem>>, vector<1x4x8xbf16>
    %27 = vector.shape_cast %26 : vector<1x4x8xbf16> to vector<4x8xbf16>
    %cst_17 = arith.constant dense<0.000000e+00> : vector<128x8xf32>
    %28 = tpu.matmul %25, %27, %cst_17 {dimension_numbers = #tpu.dot_dimension_numbers<[1], [0], [0], [1], [0, 0, 1, 1], [], []>} : vector<128x4xbf16>, vector<4x8xbf16>, vector<128x8xf32> -> vector<128x8xf32>
    %29 = arith.addf %20, %28 : vector<128x8xf32>
    %30 = vector.extract_strided_slice %24 {offsets = [16, 0], sizes = [128, 4], strides = [1, 1]} : vector<160x4xbf16> to vector<128x4xbf16>
    %c4 = arith.constant 4 : index
    %c0_18 = arith.constant 0 : index
    %c0_19 = arith.constant 0 : index
    %31 = vector.load %arg3[%c4, %c0_18, %c0_19] : memref<9x4x8xbf16, #tpu.memory_space<vmem>>, vector<1x4x8xbf16>
    %32 = vector.shape_cast %31 : vector<1x4x8xbf16> to vector<4x8xbf16>
    %cst_20 = arith.constant dense<0.000000e+00> : vector<128x8xf32>
    %33 = tpu.matmul %30, %32, %cst_20 {dimension_numbers = #tpu.dot_dimension_numbers<[1], [0], [0], [1], [0, 0, 1, 1], [], []>} : vector<128x4xbf16>, vector<4x8xbf16>, vector<128x8xf32> -> vector<128x8xf32>
    %34 = arith.addf %29, %33 : vector<128x8xf32>
    %35 = vector.extract_strided_slice %24 {offsets = [32, 0], sizes = [128, 4], strides = [1, 1]} : vector<160x4xbf16> to vector<128x4xbf16>
    %c5 = arith.constant 5 : index
    %c0_21 = arith.constant 0 : index
    %c0_22 = arith.constant 0 : index
    %36 = vector.load %arg3[%c5, %c0_21, %c0_22] : memref<9x4x8xbf16, #tpu.memory_space<vmem>>, vector<1x4x8xbf16>
    %37 = vector.shape_cast %36 : vector<1x4x8xbf16> to vector<4x8xbf16>
    %cst_23 = arith.constant dense<0.000000e+00> : vector<128x8xf32>
    %38 = tpu.matmul %35, %37, %cst_23 {dimension_numbers = #tpu.dot_dimension_numbers<[1], [0], [0], [1], [0, 0, 1, 1], [], []>} : vector<128x4xbf16>, vector<4x8xbf16>, vector<128x8xf32> -> vector<128x8xf32>
    %39 = arith.addf %34, %38 : vector<128x8xf32>
    %c0_24 = arith.constant 0 : index
    %40 = arith.index_cast %0 : i32 to index
    %c2_25 = arith.constant 2 : index
    %c0_26 = arith.constant 0 : index
    %41 = vector.load %arg2[%c0_24, %40, %c2_25, %c0_26] : memref<1x18x18x4xbf16, #tpu.memory_space<vmem>>, vector<1x10x16x4xbf16>
    %42 = vector.shape_cast %41 : vector<1x10x16x4xbf16> to vector<10x16x4xbf16>
    %43 = vector.shape_cast %42 : vector<10x16x4xbf16> to vector<160x4xbf16>
    %44 = vector.extract_strided_slice %43 {offsets = [0, 0], sizes = [128, 4], strides = [1, 1]} : vector<160x4xbf16> to vector<128x4xbf16>
    %c6 = arith.constant 6 : index
    %c0_27 = arith.constant 0 : index
    %c0_28 = arith.constant 0 : index
    %45 = vector.load %arg3[%c6, %c0_27, %c0_28] : memref<9x4x8xbf16, #tpu.memory_space<vmem>>, vector<1x4x8xbf16>
    %46 = vector.shape_cast %45 : vector<1x4x8xbf16> to vector<4x8xbf16>
    %cst_29 = arith.constant dense<0.000000e+00> : vector<128x8xf32>
    %47 = tpu.matmul %44, %46, %cst_29 {dimension_numbers = #tpu.dot_dimension_numbers<[1], [0], [0], [1], [0, 0, 1, 1], [], []>} : vector<128x4xbf16>, vector<4x8xbf16>, vector<128x8xf32> -> vector<128x8xf32>
    %48 = arith.addf %39, %47 : vector<128x8xf32>
    %49 = vector.extract_strided_slice %43 {offsets = [16, 0], sizes = [128, 4], strides = [1, 1]} : vector<160x4xbf16> to vector<128x4xbf16>
    %c7 = arith.constant 7 : index
    %c0_30 = arith.constant 0 : index
    %c0_31 = arith.constant 0 : index
    %50 = vector.load %arg3[%c7, %c0_30, %c0_31] : memref<9x4x8xbf16, #tpu.memory_space<vmem>>, vector<1x4x8xbf16>
    %51 = vector.shape_cast %50 : vector<1x4x8xbf16> to vector<4x8xbf16>
    %cst_32 = arith.constant dense<0.000000e+00> : vector<128x8xf32>
    %52 = tpu.matmul %49, %51, %cst_32 {dimension_numbers = #tpu.dot_dimension_numbers<[1], [0], [0], [1], [0, 0, 1, 1], [], []>} : vector<128x4xbf16>, vector<4x8xbf16>, vector<128x8xf32> -> vector<128x8xf32>
    %53 = arith.addf %48, %52 : vector<128x8xf32>
    %54 = vector.extract_strided_slice %43 {offsets = [32, 0], sizes = [128, 4], strides = [1, 1]} : vector<160x4xbf16> to vector<128x4xbf16>
    %c8 = arith.constant 8 : index
    %c0_33 = arith.constant 0 : index
    %c0_34 = arith.constant 0 : index
    %55 = vector.load %arg3[%c8, %c0_33, %c0_34] : memref<9x4x8xbf16, #tpu.memory_space<vmem>>, vector<1x4x8xbf16>
    %56 = vector.shape_cast %55 : vector<1x4x8xbf16> to vector<4x8xbf16>
    %cst_35 = arith.constant dense<0.000000e+00> : vector<128x8xf32>
    %57 = tpu.matmul %54, %56, %cst_35 {dimension_numbers = #tpu.dot_dimension_numbers<[1], [0], [0], [1], [0, 0, 1, 1], [], []>} : vector<128x4xbf16>, vector<4x8xbf16>, vector<128x8xf32> -> vector<128x8xf32>
    %58 = arith.addf %53, %57 : vector<128x8xf32>
    %59 = tpu.transpose %58, [1, 0] : vector<128x8xf32> -> vector<8x128xf32>
    %c0_36 = arith.constant 0 : index
    %c0_37 = arith.constant 0 : index
    %c0_38 = arith.constant 0 : index
    %60 = vector.load %arg4[%c0_36, %c0_37, %c0_38] : memref<1x8x128xf32, #tpu.memory_space<vmem>>, vector<1x8x128xf32>
    %61 = vector.shape_cast %60 : vector<1x8x128xf32> to vector<8x128xf32>
    %62 = vector.shape_cast %59 : vector<8x128xf32> to vector<1x8x128xf32>
    tpu.vector_store %arg4[%c0_36, %c0_37, %c0_38], %62 {strides = array<i32>} : memref<1x8x128xf32, #tpu.memory_space<vmem>>, vector<1x8x128xf32>,
    return
  }
  func.func @transform_0(%arg0: i32, %arg1: i32) -> (i32, i32, i32, i32) {
    %c0_i32 = arith.constant 0 : i32
    %c0_i32_0 = arith.constant 0 : i32
    %c0_i32_1 = arith.constant 0 : i32
    %c0_i32_2 = arith.constant 0 : i32
    return %arg0, %c0_i32, %c0_i32_0, %c0_i32_1 : i32, i32, i32, i32
  }
  func.func @transform_1(%arg0: i32, %arg1: i32) -> (i32, i32, i32) {
    %c0_i32 = arith.constant 0 : i32
    %c0_i32_0 = arith.constant 0 : i32
    %c0_i32_1 = arith.constant 0 : i32
    %c0_i32_2 = arith.constant 0 : i32
    return %c0_i32, %c0_i32_0, %c0_i32_1 : i32, i32, i32
  }
  func.func @transform_2(%arg0: i32, %arg1: i32) -> (i32, i32, i32) {
    %c0_i32 = arith.constant 0 : i32
    %c0_i32_0 = arith.constant 0 : i32
    return %arg0, %c0_i32, %arg1 : i32, i32, i32
  }
}

</mosaic_0001>

<bundles_post_ra>
// kernel: _sficonv_forward.1
= control target key start
LH: loop header
LB: loop body
LE: loop exit
PB: predicated region body
PF: predicated region fallthrough
CT: control target
= control target key end

     0   :  { %s2544_s9 = smov 0   ;;  %s2546_s10 = smov 0   ;;  %s3085_s0 = inlined_call_operand.vmem [shape: bf16[2,18,18,4], index: 0, kind: input, shape index: {}]   ;;  %s3086_s1 = inlined_call_operand.vmem [shape: bf16[9,4,8], index: 1, kind: input, shape index: {}]   ;;  %s3087_s2 = inlined_call_operand.vmem [shape: f32[2,8,256], index: 2, kind: output, shape index: {}]  }
   0x1   :  { %s2548_s11 = smov 0   ;;  %s2550_s12 = smov 0  }
   0x2   :  { %s2552_s13 = smov 0  }
   0x3 LB: > { %s21_s14 = sadd.s32 1, %s2519_s11  ;;  %s24_s15 = sadd.s32 1, %s2523_s12  ;;  %s2527_s13 = sphi %s2552_s13, %s12_s13   ;;  %s2523_s12 = sphi %s2550_s12, %s3095_s12   ;;  %s2519_s11 = sphi %s2548_s11, %s3094_s11   ;;  %s2515_s10 = sphi %s2546_s10, %s3093_s10   ;;  %s2511_s9 = sphi %s2544_s9, %s3092_s9  }
   0x4   : > { %p22_p0 = scmp.ge.s32.totalorder %s21_s14, 2  ;;  %p1925_p1 = scmp.ge.s32.totalorder %s2527_s13, 1 }
   0x5   : > { %p126_p2 = scmp.lt.s32.totalorder %s2527_s13, 5 }
   0x6   : > { %s3097_s14 = smov (%p22_p0, %s21_s14), 0  ;;  %s3099_s15 = smov (!%p22_p0, %s24_s15), %s2523_s12 }
   0x7   : > { %p127_p3 = pnand %p1925_p1, %p126_p2  ;;  %p26_p4 = scmp.ge.s32.totalorder %s3099_s15, 2 }
   0x8   : > { %v1932_v0 = vld [vmem:[%s3086_s1 + $0x2] sm:$0x3] (!%p127_p3)  ;;  %vm257_vm0 = vcmask (!%p127_p3), 1041408   ;;  %p151_p5 = scmp.lt.s32.totalorder (!%p127_p3), %s2515_s10, 1  ;;  %v2584_v2 = vld [vmem:[%s3086_s1 + $0x8] sm:$0x3] (!%p127_p3) }
   0x9   : > { %s3101_s15 = smov (%p26_p4, %s3099_s15), 0  ;;  %130 = sbr.rel (%p127_p3) target bundleno = 496 (0x1f0), region = 28 }
   0xa   : > { %2428 = vmatprep.subr.msk.bf16.mxu1 (!%p127_p3), %vm257_vm0, %v1932_v0  ;;  %v259_v1 = vsel (!%p127_p3), %vm257_vm0, %v1932_v0, 0  ;;  %2432 = vmatprep.subr.msk.bf16.mxu0 (!%p127_p3), %vm257_vm0, %v2584_v2  ;;  %v2592_v3 = vsel (!%p127_p3), %vm257_vm0, %v2584_v2, 0  ;;  %s2054_s20 = smul.u32 (!%p127_p3), 96, %s2511_s9  ;;  %v1995_v4 = vld [vmem:[%s3086_s1 + $0xa] sm:$0x3] (!%p127_p3)  ;;  %vm232_vm1 = vcmask (!%p127_p3), 31744  }
   0xb   : > { %2137 = vmatpush3.bf16.msra.mxu1 (!%p127_p3), %v259_v1  ;;  %2209 = vmatpush3.bf16.msra.mxu0 (!%p127_p3), %v2592_v3  ;;  %v189_v5 = vld [vmem:[%s3086_s1] sm:$0x3] (!%p127_p3)  ;;  %v2616_v7 = vld [vmem:[%s3086_s1 + $0x4] sm:$0x3] (!%p127_p3)  ;;  %vm622_vm2 = vsmask.f32 (!%p127_p3), 3328 }
   0xc   : > { %2434 = vmatprep.subr.msk.bf16.mxu0 (!%p127_p3), %vm257_vm0, %v1995_v4  ;;  %2429 = vmatprep.subr.msk.bf16.mxu1 (!%p127_p3), %vm257_vm0, %v189_v5  ;;  %v367_v9 = vsel (!%p127_p3), %vm257_vm0, %v189_v5, 0  ;;  %vm623_vm3 = vsmask.f32 (!%p127_p3), 7440  ;;  %v1164_v44 = vsel (!%p127_p3), %vm257_vm0, %v1995_v4, 0  ;;  %vm1319_vm5 = vcmask (!%p127_p3), 1042432   ;;  %p158_p6 = scmp.lt.s32.totalorder (!%p127_p3), %s2511_s9, 1 }
   0xd   : > { %vm2659_vm4 = vmor (!%p127_p3), %vm622_vm2, %vm623_vm3  ;;  %vm1320_vm6 = vcmask (!%p127_p3), 1046532  }
   0xe   : > { %vm2879_vm7 = vmor (!%p127_p3), %vm1319_vm5, %vm1320_vm6 }
  0x10   : > { %s3103_s10 = smov (!%p151_p5, %s2515_s10), 1  ;;  %s3105_s9 = smov (!%p158_p6, %s2511_s9), 1 }
  0x11   : > { %s2438_s25 = smul.u32 216, %s3103_s10  ;;  %s1927_s19 = sshll.u32 %s3103_s10, 1 }
  0x13   : > { %s155_s28 = scalar_lea.vmem %s3085_s0, %s2438_s25 }
  0x14   : > { %s2608_s29 = scalar_lea.vmem %s155_s28, %s2054_s20  ;;  %s161_s20 = sadd.s32 %s1927_s19, %s3105_s9 }
  0x15   : > { %v2611_v6 = vld [vmem:[%s2608_s29 + $0xc] sm:$0xff]   ;;  %v2619_v8 = vld [vmem:[%s2608_s29 + $0x18] sm:$0xff]   ;;  %v2625_v10 = vld [vmem:[%s2608_s29 + $0x24] sm:$0xff]   ;;  %s1928_s21 = sshll.u32 %s161_s20, 3 }
  0x16   : > { %2138 = vmatprep.mubr.msk.bf16.mxu1 %vm232_vm1, %v2611_v6  ;;  %v595_v11 = vld [vmem:[%s2608_s29 + $0xc] sm:$0xf]  ;;  %v2633_v12 = vld [vmem:[%s2608_s29 + $0x10] sm:$0xf]  ;;  %v2636_v13 = vld [vmem:[%s2608_s29 + $0x14] sm:$0x1]  ;;  %s163_s24 = scalar_lea.vmem %s3087_s2, %s1928_s21 }
  0x17   : > { %2139 = vmatmul.mubr.msk.bf16.vlgmr.msra.gmra.mrb[0].mxu1 %vm232_vm1, %v2619_v8  ;;  %v650_v14 = vshrl.u32 %v595_v11, 16  ;;  %v653_v15 = vshll.u32 %v595_v11, 16  ;;  %v659_v16 = vshll.u32 %v2633_v12, 16  ;;  %v663_v17 = vshrl.u32 %v2633_v12, 16  ;;  %v2643_v18 = vld [vmem:[%s2608_s29 + $0x30] sm:$0xff]   ;;  %v2654_v29 = vld [vmem:[%s2608_s29 + $0x3c] sm:$0xff]  }
  0x18   : > { %2142 = vmatprep.mubr.msk.bf16.mxu1 %vm232_vm1, %v2625_v10  ;;  %2155 = vmatpush3.bf16.msra.mxu1 %v367_v9  ;;  %v669_v19 = vshll.u32 %v2636_v13, 16  ;;  %v598_v20 = vld [vmem:[%s2608_s29 + $0x18] sm:$0xf]  ;;  %v2648_v25 = vld [vmem:[%s2608_s29 + $0x1c] sm:$0xf]  ;;  %v2676_v49 = vld [vmem:[%s2608_s29 + $0x48] sm:$0xff]  }
  0x19   : > { %2430 = vmatprep.subr.msk.bf16.mxu1 %vm257_vm0, %v2616_v7  ;;  %v652_v21 = vrot.slane %v650_v14, 4  ;;  %v655_v22 = vrot.slane %v653_v15, 5  ;;  %v661_v23 = vrot.slane %v659_v16, 5  ;;  %v665_v24 = vrot.slane %v663_v17, 4  ;;  %v2651_v27 = vld [vmem:[%s2608_s29 + $0x20] sm:$0x1] }
  0x1a   : > { %v671_v26 = vrot.slane %v669_v19, 5  ;;  %v674_v28 = vshrl.u32 %v598_v20, 16  ;;  %v677_v32 = vshll.u32 %v598_v20, 16  ;;  %v683_v33 = vshll.u32 %v2648_v25, 16  ;;  %v601_v45 = vld [vmem:[%s2608_s29 + $0x24] sm:$0xf] }
  0x1b   : > { %v656_v30 = vor.u32 %v655_v22, %v652_v21  ;;  %v666_v31 = vor.u32 %v665_v24, %v661_v23  ;;  %v687_v36 = vshrl.u32 %v2648_v25, 16  ;;  %v693_v37 = vshll.u32 %v2651_v27, 16  ;;  %v2679_v50 = vld [vmem:[%s2608_s29 + $0x28] sm:$0xf]  ;;  %v2682_v51 = vld [vmem:[%s2608_s29 + $0x2c] sm:$0x1] }
  0x1c   : > { %v676_v35 = vrot.slane %v674_v28, 4  ;;  %v679_v40 = vrot.slane %v677_v32, 5  ;;  %v685_v41 = vrot.slane %v683_v33, 5  ;;  %v698_v52 = vshrl.u32 %v601_v45, 16  ;;  %v604_v57 = vld [vmem:[%s2608_s29 + $0x30] sm:$0xf] }
  0x1d   : > { %v657_v38 = vrot.slane %v656_v30, 4  ;;  %v667_v39 = vrot.slane %v666_v31, 4  ;;  %v689_v42 = vrot.slane %v687_v36, 4  ;;  %v695_v43 = vrot.slane %v693_v37, 5  ;;  %v2689_v58 = vld [vmem:[%s2608_s29 + $0x34] sm:$0xf] }
  0x1e   : > { %v680_v48 = vor.u32 %v679_v40, %v676_v35  ;;  %v701_v55 = vshll.u32 %v601_v45, 16  ;;  %v707_v56 = vshll.u32 %v2679_v50, 16  ;;  %v2692_v59 = vld [vmem:[%s2608_s29 + $0x54] sm:$0xff]   ;;  %v700_v61 = vrot.slane %v698_v52, 4  ;;  %v2709_v22 = vld [vmem:[%s3086_s1 + $0xc] sm:$0x3] }
  0x1f   : > { %2143 = vmatmul.mubr.msk.bf16.gmra.mrb[4].mxu1 %vm232_vm1, %v2643_v18  ;;  %v662_v46 = vsel %vm2659_vm4, %v657_v38, %v661_v23  ;;  %v672_v47 = vsel %vm2659_vm4, %v667_v39, %v671_v26  ;;  %v690_v54 = vor.u32 %v689_v42, %v685_v41  ;;  %v711_v62 = vshrl.u32 %v2679_v50, 16  ;;  %v2697_v0 = vld [vmem:[%s2608_s29 + $0x38] sm:$0x1]  ;;  %v607_v33 = vld [vmem:[%s2608_s29 + $0x3c] sm:$0xf] }
  0x20   : > { %2146 = vmatprep.mubr.msk.bf16.mxu1 %vm232_vm1, %v2654_v29  ;;  %v2684_v53 = vcombine.low %v662_v46, %v672_v47  ;;  %v681_v60 = vrot.slane %v680_v48, 4  ;;  %v717_v63 = vshll.u32 %v2682_v51, 16  ;;  %v703_v4 = vrot.slane %v701_v55, 5  ;;  %v2723_v38 = vld [vmem:[%s2608_s29 + $0x40] sm:$0xf] }
  0x21   : > { %v691_v1 = vrot.slane %v690_v54, 4  ;;  %v709_v5 = vrot.slane %v707_v56, 5  ;;  %v722_v9 = vshrl.u32 %v604_v57, 16  ;;  %v713_v14 = vrot.slane %v711_v62, 4  ;;  %v2735_v48 = vld [vmem:[%s2608_s29 + $0x44] sm:$0x1] }
  0x22   : > { %2210 = vmatprep.mubr.msk.bf16.mxu0 %vm232_vm1, %v2684_v53  ;;  %v686_v11 = vsel %vm2659_vm4, %v681_v60, %v685_v41  ;;  %v719_v15 = vrot.slane %v717_v63, 5  ;;  %v725_v16 = vshll.u32 %v604_v57, 16  ;;  %v704_v19 = vor.u32 %v703_v4, %v700_v61  ;;  %v2728_v41 = vld [vmem:[%s2608_s29 + $0x60] sm:$0xff]   ;;  %v610_v52 = vld [vmem:[%s2608_s29 + $0x48] sm:$0xf] }
  0x23   : > { %v696_v17 = vsel %vm2659_vm4, %v691_v1, %v695_v43  ;;  %v724_v20 = vrot.slane %v722_v9, 4  ;;  %v731_v21 = vshll.u32 %v2689_v58, 16  ;;  %v714_v24 = vor.u32 %v713_v14, %v709_v5  ;;  %v2487_v55 = vld [vmem:[%s2608_s29] sm:$0xff]   ;;  %v2744_v61 = vld [vmem:[%s2608_s29 + $0x4c] sm:$0xf] }
  0x24   : > { %v2711_v23 = vcombine.low %v686_v11, %v696_v17  ;;  %v727_v26 = vrot.slane %v725_v16, 5  ;;  %v735_v28 = vshrl.u32 %v2689_v58, 16  ;;  %v705_v30 = vrot.slane %v704_v19, 4  ;;  %v613_v19 = vld [vmem:[%s2608_s29 + $0x54] sm:$0xf] }
  0x25   : > { %v733_v31 = vrot.slane %v731_v21, 5  ;;  %v741_v32 = vshll.u32 %v2697_v0, 16  ;;  %v715_v35 = vrot.slane %v714_v24, 4  ;;  %v746_v42 = vshrl.u32 %v607_v33, 16 }
  0x26   : > { %2211 = vmatmul.mubr.msk.bf16.vlgmr.msra.gmra.mrb[0].mxu0 %vm232_vm1, %v2711_v23  ;;  %v728_v36 = vor.u32 %v727_v26, %v724_v20  ;;  %v737_v37 = vrot.slane %v735_v28, 4  ;;  %v710_v39 = vsel %vm2659_vm4, %v705_v30, %v709_v5  ;;  %v749_v43 = vshll.u32 %v607_v33, 16  ;;  %v2765_v26 = vld [vmem:[%s2608_s29 + $0x58] sm:$0xf]  ;;  %v2768_v28 = vld [vmem:[%s2608_s29 + $0x50] sm:$0x1] }
  0x27   : > { %2147 = vmatmul.mubr.msk.bf16.gmra.mrb[8].mxu1 %vm232_vm1, %v2676_v49  ;;  %2227 = vmatpush3.bf16.msra.mxu0 %v1164_v44  ;;  %v743_v40 = vrot.slane %v741_v32, 5  ;;  %v720_v45 = vsel %vm2659_vm4, %v715_v35, %v719_v15  ;;  %v755_v44 = vshll.u32 %v2723_v38, 16  ;;  %v748_v56 = vrot.slane %v746_v42, 4  ;;  %v616_v42 = vld [vmem:[%s2608_s29 + $0x60] sm:$0xf] }
  0x28   : > { %2150 = vmatprep.mubr.msk.bf16.mxu1 %vm232_vm1, %v2692_v59  ;;  %v729_v46 = vrot.slane %v728_v36, 4  ;;  %v738_v47 = vor.u32 %v737_v37, %v733_v31  ;;  %2435 = vmatprep.subr.msk.bf16.mxu0 %vm257_vm0, %v2709_v22  ;;  %v2739_v54 = vcombine.low %v710_v39, %v720_v45  ;;  %v751_v57 = vrot.slane %v749_v43, 5 }
  0x29   : > { %v759_v60 = vshrl.u32 %v2723_v38, 16  ;;  %v2748_v1 = vrot.slane %v755_v44, 5  ;;  %v765_v5 = vshll.u32 %v2735_v48, 16  ;;  %v770_v9 = vshrl.u32 %v610_v52, 16  ;;  %v2782_v44 = vld [vmem:[%s2608_s29 + $0x64] sm:$0xf] }
  0x2a   : > { %v734_v62 = vsel %vm2659_vm4, %v729_v46, %v733_v31  ;;  %v739_v63 = vrot.slane %v738_v47, 4  ;;  %2214 = vmatprep.mubr.msk.bf16.mxu0 %vm232_vm1, %v2739_v54  ;;  %v773_v11 = vshll.u32 %v610_v52, 16  ;;  %v752_v15 = vor.u32 %v751_v57, %v748_v56  ;;  %v2791_v56 = vld [vmem:[%s3086_s1 + $0x6] sm:$0x3] }
  0x2b   : > { %v761_v4 = vrot.slane %v759_v60, 4  ;;  %v779_v16 = vshll.u32 %v2744_v61, 16  ;;  %v783_v17 = vshrl.u32 %v2744_v61, 16  ;;  %v772_v24 = vrot.slane %v770_v9, 4  ;;  %v2794_v60 = vld [vmem:[%s2608_s29 + $0x5c] sm:$0x1] }
  0x2c   : > { %v744_v14 = vsel %vm2659_vm4, %v739_v63, %v743_v40  ;;  %v775_v30 = vrot.slane %v773_v11, 5  ;;  %v794_v33 = vshrl.u32 %v613_v19, 16  ;;  %v797_v35 = vshll.u32 %v613_v19, 16  ;;  %v619_v11 = vld [vmem:[%s2608_s29 + $0x6c] sm:$0xf] }
  0x2d   : > { %v2760_v20 = vcombine.low %v734_v62, %v744_v14  ;;  %v762_v21 = vor.u32 %v761_v4, %v2748_v1  ;;  %v2770_v31 = vrot.slane %v779_v16, 5  ;;  %v785_v32 = vrot.slane %v783_v17, 4  ;;  %v2815_v19 = vld [vmem:[%s3086_s1 + $0xe] sm:$0x3] }
  0x2e   : > { %v753_v36 = vrot.slane %v752_v15, 4  ;;  %v767_v37 = vrot.slane %v765_v5, 5  ;;  %v776_v39 = vor.u32 %v775_v30, %v772_v24  ;;  %v803_v40 = vshll.u32 %v2765_v26, 16 }
  0x2f   : > { %2151 = vmatmul.mubr.msk.bf16.gmra.mrb[12].mxu1 %vm232_vm1, %v2728_v41  ;;  %2215 = vmatmul.mubr.msk.bf16.gmra.mrb[4].mxu0 %vm232_vm1, %v2760_v20  ;;  %v763_v43 = vrot.slane %v762_v21, 4  ;;  %v786_v45 = vor.u32 %v785_v32, %v2770_v31  ;;  %v789_v46 = vshll.u32 %v2768_v28, 16  ;;  %v807_v47 = vshrl.u32 %v2765_v26, 16  ;;  %v2818_v21 = vld [vmem:[%s2608_s29 + $0x68] sm:$0x1] }
  0x30   : > { %2156 = vmatprep.mubr.msk.bf16.mxu1 %vm232_vm1, %v2487_v55  ;;  %2228 = vmatprep.mubr.msk.bf16.mxu0 %vm232_vm1, %v2711_v23  ;;  %v1443_v52 = vsel %vm257_vm0, %v2709_v22, 0  ;;  %v477_v55 = vsel %vm257_vm0, %v2616_v7, 0  ;;  %v777_v57 = vrot.slane %v776_v39, 4  ;;  %v796_v62 = vrot.slane %v794_v33, 4 }
  0x31   : > { %v799_v63 = vrot.slane %v797_v35, 5  ;;  %v818_v4 = vshrl.u32 %v616_v42, 16  ;;  %v2798_v22 = vrot.slane %v803_v40, 5  ;;  %v809_v5 = vrot.slane %v807_v47, 4 }
  0x32   : > { %v821_v7 = vshll.u32 %v616_v42, 16  ;;  %v827_v9 = vshll.u32 %v2782_v44, 16  ;;  %v758_v14 = vsel %vm2659_vm4, %v753_v36, %v2748_v1  ;;  %v768_v15 = vsel %vm2659_vm4, %v763_v43, %v767_v37 }
  0x33   : > { %v787_v16 = vrot.slane %v786_v45, 4  ;;  %v791_v17 = vrot.slane %v789_v46, 5  ;;  %v820_v24 = vrot.slane %v818_v4, 4  ;;  %v831_v32 = vshrl.u32 %v2782_v44, 16 }
  0x34   : > { %v823_v1 = vrot.slane %v821_v7, 5  ;;  %v829_v30 = vrot.slane %v827_v9, 5  ;;  %v782_v33 = vsel %vm2659_vm4, %v777_v57, %v2770_v31  ;;  %v800_v35 = vor.u32 %v799_v63, %v796_v62 }
  0x35   : > { %v813_v36 = vshll.u32 %v2794_v60, 16  ;;  %v842_v37 = vshrl.u32 %v619_v11, 16  ;;  %v810_v39 = vor.u32 %v809_v5, %v2798_v22  ;;  %v833_v40 = vrot.slane %v831_v32, 4 }
  0x36   : > { %v845_v42 = vshll.u32 %v619_v11, 16  ;;  %v792_v45 = vsel %vm2659_vm4, %v787_v16, %v791_v17  ;;  %v824_v46 = vor.u32 %v823_v1, %v820_v24  ;;  %v837_v31 = vshll.u32 %v2818_v21, 16  ;;  %v2846_v16 = vld [vmem:[%s2608_s29 + $0x74] sm:$0x1]  ;;  %v2851_v24 = vld [vmem:[%s2608_s29 + $0x4] sm:$0xf] }
  0x37   : > { %2157 = vmatmul.mubr.msk.bf16.vlgmr.msra.gmra.mrb[0].mxu1 %vm232_vm1, %v2611_v6  ;;  %v2810_v6 = vld [vmem:[%s2608_s29 + $0x70] sm:$0xf]  ;;  %2229 = vmatmul.mubr.msk.bf16.vlgmr.msra.gmra.mrb[0].mxu0 %vm232_vm1, %v2739_v54  ;;  %v844_v57 = vrot.slane %v842_v37, 4  ;;  %v2843_v5 = vcombine.low %v782_v33, %v792_v45  ;;  %v801_v7 = vrot.slane %v800_v35, 4  ;;  %v811_v9 = vrot.slane %v810_v39, 4 }
  0x38   : > { %2160 = vmatprep.mubr.msk.bf16.mxu1 %vm232_vm1, %v2619_v8  ;;  %2173 = vmatpush3.bf16.msra.mxu1 %v477_v55  ;;  %v851_v43 = vshll.u32 %v2810_v6, 16  ;;  %v855_v47 = vshrl.u32 %v2810_v6, 16  ;;  %v834_v55 = vor.u32 %v833_v40, %v829_v30  ;;  %v847_v62 = vrot.slane %v845_v42, 5  ;;  %v1280_v39 = vld [vmem:[%s2608_s29 + $0xc] sm:$0xe] }
  0x39   : > { %2431 = vmatprep.subr.msk.bf16.mxu1 %vm257_vm0, %v2791_v56  ;;  %2245 = vmatpush3.bf16.msra.mxu0 %v1443_v52  ;;  %v2839_v52 = vcombine.low %v758_v14, %v768_v15  ;;  %v815_v11 = vrot.slane %v813_v36, 5  ;;  %v825_v14 = vrot.slane %v824_v46, 4  ;;  %v839_v17 = vrot.slane %v837_v31, 5  ;;  %v1279_v45 = vld [vmem:[%s2608_s29] sm:$0xe] }
  0x3a   : > { %2232 = vmatprep.mubr.msk.bf16.mxu0 %vm232_vm1, %v2760_v20  ;;  %2436 = vmatprep.subr.msk.bf16.mxu0 %vm257_vm0, %v2815_v19  ;;  %v853_v63 = vrot.slane %v851_v43, 5  ;;  %v857_v4 = vrot.slane %v855_v47, 4  ;;  %v835_v15 = vrot.slane %v834_v55, 4  ;;  %v848_v1 = vor.u32 %v847_v62, %v844_v57 }
  0x3b   : > { %v861_v33 = vshll.u32 %v2846_v16, 16  ;;  %v1331_v35 = vrot.slane %v2633_v12, 5  ;;  %v806_v36 = vsel %vm2659_vm4, %v801_v7, %v2798_v22  ;;  %v816_v37 = vsel %vm2659_vm4, %v811_v9, %v815_v11  ;;  %v594_v12 = vld [vmem:[%s2608_s29 + $0x8] sm:$0x1] }
  0x3c   : > { %v858_v32 = vor.u32 %v857_v4, %v853_v63  ;;  %v830_v40 = vsel %vm2659_vm4, %v825_v14, %v829_v30  ;;  %v840_v42 = vsel %vm2659_vm4, %v835_v15, %v839_v17  ;;  %v1324_v43 = vrot.slane %v2851_v24, 5  ;;  %v1281_v14 = vld [vmem:[%s2608_s29 + $0x18] sm:$0xe] }
  0x3d   : > { %v2872_v46 = vcombine.low %v806_v36, %v816_v37  ;;  %v849_v22 = vrot.slane %v848_v1, 4  ;;  %v863_v47 = vrot.slane %v861_v33, 5  ;;  %v2006_v55 = vrot.slane %v1280_v39, 9 }
  0x3e   : > { %v859_v31 = vrot.slane %v858_v32, 4  ;;  %v1333_v57 = vrot.slane %v1331_v35, 4  ;;  %v1334_v30 = vrot.slane %v2636_v13, 5  ;;  %v2877_v62 = vcombine.low %v830_v40, %v840_v42  ;;  %v592_v13 = vld [vmem:[%s2608_s29] sm:$0xf] }
  0x3f   : > { %2161 = vmatmul.mubr.msk.bf16.gmra.mrb[4].mxu1 %vm232_vm1, %v2625_v10  ;;  %2233 = vmatmul.mubr.msk.bf16.gmra.mrb[4].mxu0 %vm232_vm1, %v2839_v52  ;;  %v2005_v7 = vrot.slane %v1279_v45, 9  ;;  %v1326_v9 = vrot.slane %v1324_v43, 4  ;;  %v1327_v11 = vrot.slane %v594_v12, 5  ;;  %v1338_v15 = vrot.slane %v2648_v25, 5  ;;  %v1287_v40 = vld [vmem:[%s2608_s29 + $0x60] sm:$0xe] }
  0x40   : > { %2164 = vmatprep.mubr.msk.bf16.mxu1 %vm232_vm1, %v2643_v18  ;;  %2236 = vmatprep.mubr.msk.bf16.mxu0 %vm232_vm1, %v2843_v5  ;;  %v854_v17 = vsel %vm2659_vm4, %v849_v22, %v853_v63  ;;  %v864_v1 = vsel %vm2659_vm4, %v859_v31, %v863_v47  ;;  %v1332_v32 = vsel %vm2879_vm7, %v2006_v55, %v1331_v35  ;;  %v2007_v25 = vrot.slane %v1281_v14, 9 }
  0x41   : > { %v1335_v33 = vsel %vm2879_vm7, %v1333_v57, %v1334_v30  ;;  %v1325_v36 = vsel %vm2879_vm7, %v2005_v7, %v1324_v43  ;;  %v1328_v63 = vsel %vm2879_vm7, %v1326_v9, %v1327_v11  ;;  %v626_v37 = vshrl.u32 %v592_v13, 16  ;;  %v1288_v30 = vld [vmem:[%s2608_s29 + $0x6c] sm:$0xe] }
  0x42   : > { %v629_v39 = vshll.u32 %v592_v13, 16  ;;  %v1996_v42 = vcombine.low %v854_v17, %v864_v1  ;;  %v1340_v45 = vrot.slane %v1338_v15, 4  ;;  %v1341_v35 = vrot.slane %v2651_v27, 5 }
  0x43   : > { %v635_v22 = vshll.u32 %v2851_v24, 16  ;;  %v628_v31 = vrot.slane %v626_v37, 4  ;;  %v639_v55 = vshrl.u32 %v2851_v24, 16  ;;  %v645_v57 = vshll.u32 %v594_v12, 16 }
  0x44   : > { %v631_v47 = vrot.slane %v629_v39, 5  ;;  %v2016_v43 = vcombine.low %v1325_v36, %v1328_v63  ;;  %v2013_v9 = vrot.slane %v1287_v40, 9  ;;  %v1380_v11 = vrot.slane %v2782_v44, 5 }
  0x45   : > { %v637_v7 = vrot.slane %v635_v22, 5  ;;  %v1339_v27 = vsel %vm2879_vm7, %v2007_v25, %v1338_v15  ;;  %v1345_v14 = vrot.slane %v2679_v50, 5  ;;  %v641_v12 = vrot.slane %v639_v55, 4  ;;  %v1282_v15 = vld [vmem:[%s2608_s29 + $0x24] sm:$0xe] }
  0x46   : > { %v632_v24 = vor.u32 %v631_v47, %v628_v31  ;;  %v1381_v13 = vsel %vm2879_vm7, %v2013_v9, %v1380_v11  ;;  %v1382_v17 = vrot.slane %v1380_v11, 4  ;;  %v1383_v1 = vrot.slane %v2818_v21, 5  ;;  %v1284_v11 = vld [vmem:[%s2608_s29 + $0x3c] sm:$0xe] }
  0x47   : > { %2165 = vmatmul.mubr.msk.bf16.gmra.mrb[8].mxu1 %vm232_vm1, %v2654_v29  ;;  %2237 = vmatmul.mubr.msk.bf16.gmra.mrb[8].mxu0 %vm232_vm1, %v2872_v46  ;;  %v2014_v36 = vrot.slane %v1288_v30, 9  ;;  %v647_v63 = vrot.slane %v645_v57, 5  ;;  %v1387_v37 = vrot.slane %v2810_v6, 5  ;;  %v1342_v50 = vsel %vm2879_vm7, %v1340_v45, %v1341_v35  ;;  %v1283_v35 = vld [vmem:[%s2608_s29 + $0x30] sm:$0xe] }
  0x48   : > { %2168 = vmatprep.mubr.msk.bf16.mxu1 %vm232_vm1, %v2676_v49  ;;  %2240 = vmatprep.mubr.msk.bf16.mxu0 %vm232_vm1, %v2877_v62  ;;  %v633_v44 = vrot.slane %v632_v24, 4  ;;  %v1352_v25 = vrot.slane %v2689_v58, 5  ;;  %v1384_v21 = vsel %vm2879_vm7, %v1382_v17, %v1383_v1  ;;  %v1390_v39 = vrot.slane %v2846_v16, 5  ;;  %v1285_v24 = vld [vmem:[%s2608_s29 + $0x48] sm:$0xe] }
  0x49   : > { %v2932_v22 = vcombine.low %v1381_v13, %v1384_v21  ;;  %v2936_v6 = vsel %vm2879_vm7, %v2014_v36, %v1387_v37  ;;  %v1567_v45 = vsel %vm257_vm0, %v2815_v19, 0  ;;  %v916_v58 = vsel %vm257_vm0, %v2791_v56, 0 }
  0x4a   : > { %v638_v40 = vsel %vm2659_vm4, %v633_v44, %v637_v7  ;;  %v1389_v31 = vrot.slane %v1387_v37, 4  ;;  %v2943_v47 = vcombine.low %v1332_v32, %v1335_v33  ;;  %v2008_v16 = vrot.slane %v1282_v15, 9  ;;  %v2042_v32 = vld [vmem:[%s3086_s1 + $0x10] sm:$0x3] }
  0x4b   : > { %v1348_v55 = vrot.slane %v2682_v51, 5  ;;  %v2950_v30 = vcombine.low %v1339_v27, %v1342_v50  ;;  %v2009_v56 = vrot.slane %v1283_v35, 9  ;;  %v1354_v51 = vrot.slane %v1352_v25, 4 }
  0x4c   : > { %v1355_v34 = vrot.slane %v2697_v0, 5  ;;  %v1359_v33 = vrot.slane %v2723_v38, 5  ;;  %v1366_v27 = vrot.slane %v2744_v61, 5  ;;  %v2010_v13 = vrot.slane %v1284_v11, 9 }
  0x4d   : > { %v1353_v9 = vsel %vm2879_vm7, %v2009_v56, %v1352_v25  ;;  %v1362_v17 = vrot.slane %v2735_v48, 5  ;;  %v2011_v1 = vrot.slane %v1285_v24, 9  ;;  %v1369_v61 = vrot.slane %v2768_v28, 5  ;;  %v1286_v28 = vld [vmem:[%s2608_s29 + $0x54] sm:$0xe] }
  0x4e   : > { %v1361_v38 = vrot.slane %v1359_v33, 4  ;;  %v1368_v36 = vrot.slane %v1366_v27, 4  ;;  %v1373_v48 = vrot.slane %v2765_v26, 5  ;;  %v2012_v50 = vrot.slane %v1286_v28, 9 }
  0x4f   : > { %2169 = vmatmul.mubr.msk.bf16.gmra.mrb[12].mxu1 %vm232_vm1, %v2692_v59  ;;  %2241 = vmatmul.mubr.msk.bf16.gmra.mrb[12].mxu0 %vm232_vm1, %v1996_v42  ;;  %v1376_v25 = vrot.slane %v2794_v60, 5 }
  0x50   : > { %2174 = vmatprep.mubr.msk.bf16.mxu1 %vm232_vm1, %v2619_v8  ;;  %v642_v8 = vor.u32 %v641_v12, %v637_v7  ;;  %2246 = vmatprep.mubr.msk.bf16.mxu0 %vm232_vm1, %v2016_v43  ;;  %v1347_v43 = vrot.slane %v1345_v14, 4  ;;  %v2954_v7 = vsel %vm2879_vm7, %v1389_v31, %v1390_v39  ;;  %v1363_v44 = vsel %vm2879_vm7, %v1361_v38, %v1362_v17  ;;  %v2488_v39 = vld [vmem:[%s2608_s29 + $0x6c] sm:$0xff]  }
  0x51   : > { %v1375_v15 = vrot.slane %v1373_v48, 4  ;;  %v1374_v26 = vsel %vm2879_vm7, %v2012_v50, %v1373_v48 }
  0x52   : > { %v643_v42 = vrot.slane %v642_v8, 4  ;;  %v1349_v0 = vsel %vm2879_vm7, %v1347_v43, %v1348_v55  ;;  %v1370_v8 = vsel %vm2879_vm7, %v1368_v36, %v1369_v61 }
  0x53   : > { %v1377_v21 = vsel %vm2879_vm7, %v1375_v15, %v1376_v25 }
  0x54   : > { %v648_v57 = vsel %vm2659_vm4, %v643_v42, %v647_v63 }
  0x55   : > { %v1969_v19 = vcombine.low %v638_v40, %v648_v57 }
  0x57   : > { %2175 = vmatmul.mubr.msk.bf16.vlgmr.msra.gmra.mrb[0].mxu1 %vm232_vm1, %v2625_v10  ;;  %v2043_v10 = vcombine.low %v2936_v6, %v2954_v7  ;;  %2247 = vmatmul.mubr.msk.bf16.vlgmr.msra.gmra.mrb[0].mxu0 %vm232_vm1, %v2943_v47 }
  0x58   : > { %2178 = vmatprep.mubr.msk.bf16.mxu1 %vm232_vm1, %v2643_v18  ;;  %2191 = vmatpush3.bf16.msra.mxu1 %v916_v58  ;;  %v1346_v18 = vsel %vm2879_vm7, %v2008_v16, %v1345_v14 }
  0x59   : > { %2433 = vmatprep.subr.msk.bf16.mxu1 %vm257_vm0, %v2584_v2  ;;  %2263 = vmatpush3.bf16.msra.mxu0 %v1567_v45  ;;  %v1356_v2 = vsel %vm2879_vm7, %v1354_v51, %v1355_v34  ;;  %v2019_v12 = vcombine.low %v1346_v18, %v1349_v0 }
  0x5a   : > { %2250 = vmatprep.mubr.msk.bf16.mxu0 %vm232_vm1, %v2950_v30  ;;  %2437 = vmatprep.subr.msk.bf16.mxu0 %vm257_vm0, %v2042_v32  ;;  %v2020_v14 = vcombine.low %v1353_v9, %v1356_v2 }
  0x5f   : > { %2179 = vmatmul.mubr.msk.bf16.gmra.mrb[4].mxu1 %vm232_vm1, %v2654_v29  ;;  %2251 = vmatmul.mubr.msk.bf16.gmra.mrb[4].mxu0 %vm232_vm1, %v2019_v12  ;;  %v1360_v29 = vsel %vm2879_vm7, %v2010_v13, %v1359_v33 }
  0x60   : > { %2182 = vmatprep.mubr.msk.bf16.mxu1 %vm232_vm1, %v2676_v49  ;;  %2254 = vmatprep.mubr.msk.bf16.mxu0 %vm232_vm1, %v2020_v14  ;;  %v1367_v49 = vsel %vm2879_vm7, %v2011_v1, %v1366_v27  ;;  %v2021_v63 = vcombine.low %v1360_v29, %v1363_v44 }
  0x61   : > { %v2022_v37 = vcombine.low %v1367_v49, %v1370_v8 }
  0x67   : > { %2183 = vmatmul.mubr.msk.bf16.gmra.mrb[8].mxu1 %vm232_vm1, %v2692_v59  ;;  %2255 = vmatmul.mubr.msk.bf16.gmra.mrb[8].mxu0 %vm232_vm1, %v2021_v63  ;;  %v2023_v59 = vcombine.low %v1374_v26, %v1377_v21 }
  0x68   : > { %2186 = vmatprep.mubr.msk.bf16.mxu1 %vm232_vm1, %v2728_v41  ;;  %2258 = vmatprep.mubr.msk.bf16.mxu0 %vm232_vm1, %v2022_v37  ;;  %v1691_v41 = vsel %vm257_vm0, %v2042_v32, 0 }
  0x6f   : > { %2187 = vmatmul.mubr.msk.bf16.gmra.mrb[12].mxu1 %vm232_vm1, %v2488_v39  ;;  %2259 = vmatmul.mubr.msk.bf16.gmra.mrb[12].mxu0 %vm232_vm1, %v2023_v59 }
  0x70   : > { %2192 = vmatprep.mubr.msk.bf16.mxu1 %vm232_vm1, %v1969_v19  ;;  %2264 = vmatprep.mubr.msk.bf16.mxu0 %vm232_vm1, %v2943_v47 }
  0x77   : > { %2193 = vmatmul.mubr.msk.bf16.vlgmr.msra.gmra.mrb[0].mxu1 %vm232_vm1, %v2684_v53  ;;  %2265 = vmatmul.mubr.msk.bf16.vlgmr.msra.gmra.mrb[0].mxu0 %vm232_vm1, %v2950_v30 }
  0x78   : > { %2196 = vmatprep.mubr.msk.bf16.mxu1 %vm232_vm1, %v2711_v23  ;;  %2299 = vmatpush3.bf16.msra.mxu1 %v2592_v3 }
  0x79   : > { %2281 = vmatpush3.bf16.msra.mxu0 %v1691_v41  ;;  %2268 = vmatprep.mubr.msk.bf16.mxu0 %vm232_vm1, %v2019_v12 }
  0x7f   : > { %2197 = vmatmul.mubr.msk.bf16.gmra.mrb[4].mxu1 %vm232_vm1, %v2739_v54  ;;  %2269 = vmatmul.mubr.msk.bf16.gmra.mrb[4].mxu0 %vm232_vm1, %v2020_v14 }
  0x80   : > { %2200 = vmatprep.mubr.msk.bf16.mxu1 %vm232_vm1, %v2760_v20  ;;  %2272 = vmatprep.mubr.msk.bf16.mxu0 %vm232_vm1, %v2021_v63 }
  0x87   : > { %2201 = vmatmul.mubr.msk.bf16.gmra.mrb[8].mxu1 %vm232_vm1, %v2839_v52  ;;  %2273 = vmatmul.mubr.msk.bf16.gmra.mrb[8].mxu0 %vm232_vm1, %v2022_v37 }
  0x88   : > { %2204 = vmatprep.mubr.msk.bf16.mxu1 %vm232_vm1, %v2843_v5  ;;  %2276 = vmatprep.mubr.msk.bf16.mxu0 %vm232_vm1, %v2023_v59 }
  0x8f   : > { %2205 = vmatmul.mubr.msk.bf16.gmra.mrb[12].mxu1 %vm232_vm1, %v2872_v46  ;;  %2277 = vmatmul.mubr.msk.bf16.gmra.mrb[12].mxu0 %vm232_vm1, %v2932_v22 }
  0x90   : > { %2218 = vmatprep.mubr.msk.bf16.mxu1 %vm232_vm1, %v2839_v52  ;;  %2282 = vmatprep.mubr.msk.bf16.mxu0 %vm232_vm1, %v2950_v30 }
  0x97   : > { %2219 = vmatmul.mubr.msk.bf16.vlgmr.msra.gmra.mrb[8].mxu1 %vm232_vm1, %v2843_v5  ;;  %2283 = vmatmul.mubr.msk.bf16.vlgmr.msra.gmra.mrb[0].mxu0 %vm232_vm1, %v2019_v12 }
  0x98   : > { %2222 = vmatprep.mubr.msk.bf16.mxu1 %vm232_vm1, %v2872_v46  ;;  %2286 = vmatprep.mubr.msk.bf16.mxu0 %vm232_vm1, %v2020_v14 }
  0x9f   : > { %2223 = vmatmul.mubr.msk.bf16.gmra.mrb[12].mxu1 %vm232_vm1, %v2877_v62  ;;  %2287 = vmatmul.mubr.msk.bf16.gmra.mrb[4].mxu0 %vm232_vm1, %v2021_v63 }
  0xa0   : > { %2290 = vmatprep.mubr.msk.bf16.mxu0 %vm232_vm1, %v2022_v37 }
  0xa7   : > { %2291 = vmatmul.mubr.msk.bf16.gmra.mrb[8].mxu0 %vm232_vm1, %v2023_v59 }
  0xa8   : > { %2294 = vmatprep.mubr.msk.bf16.mxu0 %vm232_vm1, %v2932_v22 }
  0xaf   : > { %2295 = vmatmul.mubr.msk.bf16.gmra.mrb[12].mxu0 %vm232_vm1, %v2043_v10 }
 0x14a   : > { %v2194_v3 = vpop.f32.mrb[0].mxu1 }
 0x14b   : > { %v952_v53 = vpop.f32.mrb[1].mxu1 }
 0x14c   : > { %v2195_v23 = vpop.f32.mrb[2].mxu1 }
 0x14d   : > { %v955_v54 = vpop.f32.mrb[3].mxu1 }
 0x152   : > { %v2198_v20 = vpop.f32.mrb[4].mxu1 }
 0x153   : > { %v968_v60 = vpop.f32.mrb[5].mxu1 }
 0x154   : > { %v2199_v52 = vpop.f32.mrb[6].mxu1 }
 0x155   : > { %v971_v5 = vpop.f32.mrb[7].mxu1 }
 0x16a   : > { %v2220_v46 = vpop.f32.mrb[8].mxu1  ;;  %v2284_v40 = vpop.f32.mrb[0].mxu0 }
 0x16b   : > { %v1108_v62 = vpop.f32.mrb[9].mxu1  ;;  %v2300_v45 = vadd.f32 %v2284_v40, %v2194_v3  ;;  %v1727_v22 = vpop.f32.mrb[1].mxu0 }
 0x16c   : > { %v2221_v4 = vpop.f32.mrb[10].mxu1  ;;  %v2285_v35 = vpop.f32.mrb[2].mxu0  ;;  %v2301_v58 = vadd.f32 %v1727_v22, %v952_v53 }
 0x16d   : > { %v1111_v42 = vpop.f32.mrb[11].mxu1  ;;  %v2302_v6 = vadd.f32 %v2285_v35, %v2195_v23  ;;  %v1730_v31 = vpop.f32.mrb[3].mxu0 }
 0x16e   : > { %v2303_v47 = vadd.f32 %v1730_v31, %v955_v54  ;;  %1806 = vxpose.xlu0.b32.start [1/16] (narrow) %v2301_v58, 8 }
 0x172   : > { %v2224_v16 = vpop.f32.mrb[12].mxu1  ;;  %v2288_v30 = vpop.f32.mrb[4].mxu0  ;;  %1807 = vxpose.xlu0.b32.cont [2/16] (narrow) %v2303_v47, 8 }
 0x173   : > { %v1124_v55 = vpop.f32.mrb[13].mxu1  ;;  %v2304_v19 = vadd.f32 %v2288_v30, %v2198_v20  ;;  %v1743_v7 = vpop.f32.mrb[5].mxu0 }
 0x174   : > { %v2225_v57 = vpop.f32.mrb[14].mxu1  ;;  %v2305_v56 = vadd.f32 %v1743_v7, %v968_v60  ;;  %v2289_v51 = vpop.f32.mrb[6].mxu0 }
 0x175   : > { %v1127_v43 = vpop.f32.mrb[15].mxu1  ;;  %v2306_v34 = vadd.f32 %v2289_v51, %v2199_v52  ;;  %v1746_v10 = vpop.f32.mrb[7].mxu0 }
 0x176   : > { %v2307_v32 = vadd.f32 %v1746_v10, %v971_v5  ;;  %1808 = vxpose.xlu0.b32.cont [3/16] (narrow) %v2300_v45, 8 }
 0x17a   : > { %v2292_v18 = vpop.f32.mrb[8].mxu0  ;;  %1809 = vxpose.xlu0.b32.cont [4/16] (narrow) %v2302_v6, 8 }
 0x17b   : > { %v2308_v0 = vadd.f32 %v2292_v18, %v2220_v46  ;;  %v1759_v33 = vpop.f32.mrb[9].mxu0 }
 0x17c   : > { %v2309_v9 = vadd.f32 %v1759_v33, %v1108_v62  ;;  %v2293_v2 = vpop.f32.mrb[10].mxu0 }
 0x17d   : > { %v2310_v11 = vadd.f32 %v2293_v2, %v2221_v4  ;;  %v1762_v27 = vpop.f32.mrb[11].mxu0 }
 0x17e   : > { %v2311_v24 = vadd.f32 %v1762_v27, %v1111_v42  ;;  %1810 = vxpose.xlu0.b32.cont [5/16] (narrow) %v2305_v56, 8 }
 0x182   : > { %v2296_v12 = vpop.f32.mrb[12].mxu0  ;;  %1811 = vxpose.xlu0.b32.cont [6/16] (narrow) %v2307_v32, 8 }
 0x183   : > { %v2312_v14 = vadd.f32 %v2296_v12, %v2224_v16  ;;  %v1775_v13 = vpop.f32.mrb[13].mxu0 }
 0x184   : > { %v2313_v38 = vadd.f32 %v1775_v13, %v1124_v55  ;;  %v2297_v17 = vpop.f32.mrb[14].mxu0 }
 0x185   : > { %v2314_v1 = vadd.f32 %v2297_v17, %v2225_v57  ;;  %v1778_v36 = vpop.f32.mrb[15].mxu0 }
 0x186   : > { %v2315_v61 = vadd.f32 %v1778_v36, %v1127_v43  ;;  %1812 = vxpose.xlu0.b32.cont [7/16] (narrow) %v2304_v19, 8 }
 0x18a   : > { %1813 = vxpose.xlu0.b32.cont [8/16] (narrow) %v2306_v34, 8 }
 0x18e   : > { %1814 = vxpose.xlu0.b32.cont [9/16] (narrow) %v2309_v9, 8 }
 0x192   : > { %1815 = vxpose.xlu0.b32.cont [10/16] (narrow) %v2311_v24, 8 }
 0x196   : > { %1816 = vxpose.xlu0.b32.cont [11/16] (narrow) %v2308_v0, 8 }
 0x19a   : > { %1817 = vxpose.xlu0.b32.cont [12/16] (narrow) %v2310_v11, 8 }
 0x19e   : > { %1818 = vxpose.xlu0.b32.cont [13/16] (narrow) %v2313_v38, 8 }
 0x1a2   : > { %1819 = vxpose.xlu0.b32.cont [14/16] (narrow) %v2315_v61, 8 }
 0x1a6   : > { %1820 = vxpose.xlu0.b32.cont [15/16] (narrow) %v2312_v14, 8 }
 0x1aa   : > { %1821 = vxpose.xlu0.b32.end [16/16] (narrow) %v2314_v1, 8 }
 0x1ee   : > { %v1822_v29 = vpop.trf.xlu0 }
 0x1ef   : > { %1838 = vst [vmem:[%s163_s24] sm:$0xff] %v1822_v29 }
 0x1f0 PF: > { %s12_s13 = sadd.s32 1, %s2527_s13   ;;  %s3092_s9 = smov %s2519_s11 }
 0x1f1   : > { %p9_p7 = scmp.ge.s32.totalorder %s12_s13, 6   ;;  %s3093_s10 = smov %s2523_s12 }
 0x1f2   : > { %s3094_s11 = smov %s3097_s14  ;;  %s3095_s12 = smov %s3101_s15 }
 0x1f3   :  { %11 = sbr.rel (!%p9_p7) target bundleno = 3 (0x3), region = 67 }

</bundles_post_ra>
